<compile_context>
chip_gen: v6e
topology: v6e:2x2x1
jax: 0.10.0
libtpu: 0.0.40
codegen_flags: <defaults>
</compile_context>

<pallas_src>
import jax
import jax.numpy as jnp
from jax.experimental import pallas as pl
from jax.experimental.pallas import tpu as pltpu


def get_same_padding(kernel_size, dilation):
    kernel_size = kernel_size + (kernel_size - 1) * (dilation - 1)
    return (kernel_size - 1) // 2


def _band_weights(w_hwio, W, P):
    """Fold the kw taps of an HWIO conv weight into banded row matmuls.

    w_hwio: (K, K, Ci, Co)  ->  B: (K, W*Ci, W*Co) with
      B[kh][(wi*Ci+ci), (wo*Co+co)] = w[kh, wi-wo+P, ci, co]   (0 outside band)
    Out-of-image width taps simply have no row => zero 'same' padding for free.
    """
    K, _, Ci, Co = w_hwio.shape
    wi = jnp.arange(W)[:, None]
    wo = jnp.arange(W)[None, :]
    kw = wi - wo + P                                   # (W, W)
    valid = jnp.logical_and(kw >= 0, kw < K)
    kw_c = jnp.clip(kw, 0, K - 1)
    taps = w_hwio[:, kw_c]                             # (K, W, W, Ci, Co)
    taps = jnp.where(valid[None, :, :, None, None], taps, 0.0)
    return jnp.transpose(taps, (0, 1, 3, 2, 4)).reshape(K, W * Ci, W * Co)


def _make_resblock_kernel(has_proj, H, W, Cin, Cmid, Cout, K, P, TH):
    MH = TH + 2 * P          # conv1 rows per tile (output rows + conv2 halo)
    SH = TH + 4 * P          # input-slab rows per tile (+ conv1 halo)

    def kernel(*refs):
        if has_proj:
            (x_ref, b1w_ref, b1b_ref, b2w_ref, b2b_ref, wr_ref, brb_ref,
             o_ref, xpad_ref) = refs
        else:
            (x_ref, b1w_ref, b1b_ref, b2w_ref, b2b_ref,
             o_ref, xpad_ref) = refs
            wr_ref = brb_ref = None

        t = pl.program_id(1)

        # Build the height-zero-padded copy of this batch's image once per
        # batch (the x block only changes with the batch index; t restarts at
        # 0 for every batch a core owns, so the t==0 guard is safe).  Only the
        # 2P halo row strips are zeroed; the interior is one aligned copy.
        @pl.when(t == 0)
        def _():
            xpad_ref[0:2 * P, :] = jnp.zeros((2 * P, W * Cin), jnp.float32)
            xpad_ref[2 * P + H:2 * P + H + 2 * P, :] = jnp.zeros(
                (2 * P, W * Cin), jnp.float32)
            xpad_ref[2 * P:2 * P + H, :] = x_ref[...]

        r0 = pl.multiple_of(t * TH, TH)       # first output row of this tile

        # Input slab: rows [r0, r0 + SH) of the height-padded image.
        xs = xpad_ref[pl.ds(r0, SH), :]       # (SH, W*Cin), f32

        cdt = b1w_ref.dtype                   # MXU operand dtype (f32 / bf16)
        xs_c = xs.astype(cdt)                 # single hoisted cast of the slab

        # ---- conv1 (3x3, 'same') + bias + ReLU over MH rows ----------------
        acc1 = jnp.zeros((MH, W * Cmid), jnp.float32)
        for kh in range(K):                   # 3 fat row matmuls, depth W*Cin
            acc1 = acc1 + jnp.dot(xs_c[kh:kh + MH, :], b1w_ref[kh],
                                  preferred_element_type=jnp.float32)
        mid = jnp.maximum(acc1 + b1b_ref[...], 0.0)

        # Rows of the mid slab outside the image are conv2's zero padding;
        # mask instead of branching on first/last tile.
        row = r0 - P + jax.lax.broadcasted_iota(jnp.int32, (MH, 1), 0)
        mid = jnp.where(jnp.logical_and(row >= 0, row < H), mid, 0.0)
        mid_c = mid.astype(cdt)

        # ---- conv2 (3x3, 'same') + bias over the TH output rows ------------
        acc2 = jnp.zeros((TH, W * Cout), jnp.float32)
        for kh in range(K):                   # 3 fat row matmuls, depth W*Cmid
            acc2 = acc2 + jnp.dot(mid_c[kh:kh + TH, :], b2w_ref[kh],
                                  preferred_element_type=jnp.float32)
        acc2 = acc2 + b2b_ref[...]

        # ---- residual -------------------------------------------------------
        res = xs[2 * P:2 * P + TH, :]         # == x rows [r0, r0+TH), (TH, W*Cin)
        if has_proj:                          # 1x1 conv as block-diag row matmul
            res = jnp.dot(res.astype(wr_ref.dtype), wr_ref[...],
                          preferred_element_type=jnp.float32) + brb_ref[...]
        # else: Cin == Cout, the (w*C + c) layouts match elementwise.

        # Lane-dense store: last dim = W*Cout.
        o_ref[...] = (acc2 + res).astype(o_ref.dtype)

    return kernel


def resblock_pallas(x_nchw, w1, b1, w2, b2, wr=None, br=None,
                    kernel_size=3, dilation=1, tile_h=8,
                    compute_dtype=jnp.float32):
    """Fused ResBlock forward.

    x_nchw : (N, Cin, H, W) float32 (PyTorch layout)
    w1     : (K, K, Cin, Cmid) HWIO, b1: (Cmid,)
    w2     : (K, K, Cmid, Cout) HWIO, b2: (Cout,)
    wr, br : optional 1x1 projection (Cin, Cout), (Cout,)  [res_translate]
    compute_dtype: set jnp.bfloat16 on v6e/v7x for MXU throughput (f32 accum).
    Returns (N, Cout, H, W).
    """
    assert kernel_size == 3 and dilation == 1, \
        "TODO(synk): only the module-default 3x3 / dilation=1 path is lowered"
    K = kernel_size
    P = get_same_padding(kernel_size, dilation)

    x = jnp.transpose(x_nchw, (0, 2, 3, 1)).astype(jnp.float32)   # NHWC
    N, H, W, Cin = x.shape
    Cmid = w1.shape[3]
    Cout = w2.shape[3]
    has_proj = wr is not None
    if not has_proj:
        assert Cin == Cout, "identity residual requires inplanes == planes"

    # Output-row tile: prefer a sublane-aligned 8-row tile that divides H.
    TH = tile_h if (H % tile_h == 0 and tile_h % 8 == 0) else H
    T = H // TH
    MH = TH + 2 * P

    # Lane-dense row layout: each row is a (W*C,) vector (no copy, no pad).
    x_rows = x.reshape(N, H, W * Cin)

    # Banded row-matmul weights (kw taps + channels folded into contraction).
    B1 = _band_weights(w1.astype(jnp.float32), W, P).astype(compute_dtype)
    B2 = _band_weights(w2.astype(jnp.float32), W, P).astype(compute_dtype)
    b1t = jnp.tile(b1.astype(jnp.float32), W).reshape(1, W * Cmid)
    b2t = jnp.tile(b2.astype(jnp.float32), W).reshape(1, W * Cout)

    kernel = _make_resblock_kernel(has_proj, H, W, Cin, Cmid, Cout, K, P, TH)

    in_specs = [
        pl.BlockSpec((None, H, W * Cin), lambda n, t: (n, 0, 0)),
        pl.BlockSpec((K, W * Cin, W * Cmid), lambda n, t: (0, 0, 0)),
        pl.BlockSpec((1, W * Cmid), lambda n, t: (0, 0)),
        pl.BlockSpec((K, W * Cmid, W * Cout), lambda n, t: (0, 0, 0)),
        pl.BlockSpec((1, W * Cout), lambda n, t: (0, 0)),
    ]
    args = [x_rows, B1, b1t, B2, b2t]
    if has_proj:
        Wr = jnp.kron(jnp.eye(W, dtype=jnp.float32),
                      wr.astype(jnp.float32)).astype(compute_dtype)
        brt = jnp.tile(br.astype(jnp.float32), W).reshape(1, W * Cout)
        in_specs += [
            pl.BlockSpec((W * Cin, W * Cout), lambda n, t: (0, 0)),
            pl.BlockSpec((1, W * Cout), lambda n, t: (0, 0)),
        ]
        args += [Wr, brt]

    # Advisory cost estimate + explicit VMEM budget (inputs double-buffered).
    flops = 2 * N * T * K * (MH * (W * Cin) * (W * Cmid)
                             + TH * (W * Cmid) * (W * Cout))
    if has_proj:
        flops += 2 * N * H * (W * Cin) * (W * Cout)
    bytes_accessed = 4 * (N * H * W * (Cin + Cout)
                          + K * W * W * (Cin * Cmid + Cmid * Cout)
                          + W * (Cmid + Cout)
                          + (W * W * Cin * Cout + W * Cout if has_proj else 0))
    elt = jnp.dtype(compute_dtype).itemsize
    vmem_est = (2 * 4 * H * W * Cin                                  # x block
                + 2 * 4 * TH * W * Cout                              # out block
                + 2 * elt * K * W * W * (Cin * Cmid + Cmid * Cout)   # bands
                + (2 * elt * W * W * Cin * Cout if has_proj else 0)
                + 4 * (H + 4 * P) * W * Cin                          # xpad scratch
                + 4 * 4 * (MH * W * Cmid + TH * W * Cout))           # accum slack
    vmem_limit = int(min(64 * 1024 * 1024, max(16 * 1024 * 1024, 4 * vmem_est)))

    out_rows = pl.pallas_call(
        kernel,
        out_shape=jax.ShapeDtypeStruct((N, H, W * Cout), jnp.float32),
        grid=(N, T),
        in_specs=in_specs,
        out_specs=pl.BlockSpec((None, TH, W * Cout), lambda n, t: (n, t, 0)),
        scratch_shapes=[pltpu.VMEM((H + 4 * P, W * Cin), jnp.float32)],
        compiler_params=pltpu.CompilerParams(
            dimension_semantics=("parallel", "arbitrary"),
            vmem_limit_bytes=vmem_limit),
        cost_estimate=pl.CostEstimate(
            flops=flops, transcendentals=0, bytes_accessed=bytes_accessed),
    )(*args)

    out = out_rows.reshape(N, H, W, Cout)
    return jnp.transpose(out, (0, 3, 1, 2))     # back to NCHW


# ------------------------- pure-JAX reference -------------------------
def _conv2d_ref(x_nhwc, w_hwio, b, pad):
    out = jax.lax.conv_general_dilated(
        x_nhwc, w_hwio, window_strides=(1, 1),
        padding=[(pad, pad), (pad, pad)],
        dimension_numbers=("NHWC", "HWIO", "NHWC"))
    return out + b.reshape(1, 1, 1, -1)


def resblock_ref(x_nchw, w1, b1, w2, b2, wr=None, br=None,
                 kernel_size=3, dilation=1):
    P = get_same_padding(kernel_size, dilation)
    x = jnp.transpose(x_nchw, (0, 2, 3, 1)).astype(jnp.float32)
    out = jnp.maximum(_conv2d_ref(x, w1, b1, P), 0.0)
    out = _conv2d_ref(out, w2, b2, P)
    if wr is not None:
        res = _conv2d_ref(x, wr.reshape(1, 1, *wr.shape), br, 0)
    else:
        res = x
    return jnp.transpose(out + res, (0, 3, 1, 2))


# ------------------------------- main ---------------------------------
if __name__ == "__main__":
    key = jax.random.PRNGKey(0)
    N, C, Hs, Ws, Kk = 2, 4, 16, 16, 3

    # ---- Case 1: inplanes == planes, stride == 1 (identity residual) ----
    k1, k2, k3, k4, k5 = jax.random.split(key, 5)
    x = jax.random.normal(k1, (N, C, Hs, Ws), jnp.float32)
    w1 = 0.1 * jax.random.normal(k2, (Kk, Kk, C, C), jnp.float32)
    b1 = 0.1 * jax.random.normal(k3, (C,), jnp.float32)
    w2 = 0.1 * jax.random.normal(k4, (Kk, Kk, C, C), jnp.float32)
    b2 = 0.1 * jax.random.normal(k5, (C,), jnp.float32)

    out = jax.block_until_ready(resblock_pallas(x, w1, b1, w2, b2))
    ref = resblock_ref(x, w1, b1, w2, b2)
    assert out.shape == (N, C, Hs, Ws)
    assert jnp.allclose(out, ref, atol=1e-4, rtol=1e-4), "identity-residual mismatch"

    # ---- Case 2: inplanes != planes (1x1 res_translate, stride == 1) ----
    Cout = 8
    k6, k7, k8, k9, k10, k11 = jax.random.split(jax.random.PRNGKey(1), 6)
    w1b = 0.1 * jax.random.normal(k6, (Kk, Kk, C, Cout), jnp.float32)
    b1b = 0.1 * jax.random.normal(k7, (Cout,), jnp.float32)
    w2b = 0.1 * jax.random.normal(k8, (Kk, Kk, Cout, Cout), jnp.float32)
    b2b = 0.1 * jax.random.normal(k9, (Cout,), jnp.float32)
    wr = 0.1 * jax.random.normal(k10, (C, Cout), jnp.float32)
    br = 0.1 * jax.random.normal(k11, (Cout,), jnp.float32)

    out2 = jax.block_until_ready(resblock_pallas(x, w1b, b1b, w2b, b2b, wr, br))
    ref2 = resblock_ref(x, w1b, b1b, w2b, b2b, wr, br)
    assert out2.shape == (N, Cout, Hs, Ws)
    assert jnp.allclose(out2, ref2, atol=1e-4, rtol=1e-4), "projection-residual mismatch"

    print("KERNEL_OK")
</pallas_src>

<mosaic_0001>
module attributes {stable_mosaic.version = 11 : i64} {
  func.func @kernel(%arg0: i32, %arg1: i32, %arg2: memref<1x16x64xf32, #tpu.memory_space<vmem>>, %arg3: memref<3x64x64xf32, #tpu.memory_space<vmem>>, %arg4: memref<1x64xf32, #tpu.memory_space<vmem>>, %arg5: memref<3x64x64xf32, #tpu.memory_space<vmem>>, %arg6: memref<1x64xf32, #tpu.memory_space<vmem>>, %arg7: memref<1x8x64xf32, #tpu.memory_space<vmem>>, %arg8: memref<20x64xf32, #tpu.memory_space<vmem>>) attributes {dimension_semantics = [#tpu.dimension_semantics<parallel>, #tpu.dimension_semantics<arbitrary>], iteration_bounds = array<i64: 2, 2>, scalar_prefetch = 0 : i64, scratch_operands = 1 : i64, tpu.core_type = #tpu.core_type<tc>, window_params = [{transform_indices = @transform_0, window_bounds = array<i64: 1, 16, 64>}, {pipeline_mode = #tpu.pipeline_mode<synchronous>, transform_indices = @transform_1, window_bounds = array<i64: 3, 64, 64>}, {pipeline_mode = #tpu.pipeline_mode<synchronous>, transform_indices = @transform_2, window_bounds = array<i64: 1, 64>}, {pipeline_mode = #tpu.pipeline_mode<synchronous>, transform_indices = @transform_3, window_bounds = array<i64: 3, 64, 64>}, {pipeline_mode = #tpu.pipeline_mode<synchronous>, transform_indices = @transform_4, window_bounds = array<i64: 1, 64>}, {transform_indices = @transform_5, window_bounds = array<i64: 1, 8, 64>}]} {
    %c0_i32 = arith.constant 0 : i32
    %0 = arith.cmpi eq, %arg1, %c0_i32 : i32
    %1 = arith.extui %0 : i1 to i32
    %c0_i32_0 = arith.constant 0 : i32
    %2 = arith.cmpi ne, %1, %c0_i32_0 : i32
    scf.if %2 {
      %cst_34 = arith.constant 0.000000e+00 : f32
      %65 = vector.broadcast %cst_34 : f32 to vector<2x64xf32>
      %c0_35 = arith.constant 0 : index
      %c0_36 = arith.constant 0 : index
      %66 = vector.load %arg8[%c0_35, %c0_36] : memref<20x64xf32, #tpu.memory_space<vmem>>, vector<2x64xf32>
      tpu.vector_store %arg8[%c0_35, %c0_36], %65 {strides = array<i32>} : memref<20x64xf32, #tpu.memory_space<vmem>>, vector<2x64xf32>,
      %cst_37 = arith.constant 0.000000e+00 : f32
      %67 = vector.broadcast %cst_37 : f32 to vector<2x64xf32>
      %c18 = arith.constant 18 : index
      %c0_38 = arith.constant 0 : index
      %68 = vector.load %arg8[%c18, %c0_38] : memref<20x64xf32, #tpu.memory_space<vmem>>, vector<2x64xf32>
      tpu.vector_store %arg8[%c18, %c0_38], %67 {strides = array<i32>} : memref<20x64xf32, #tpu.memory_space<vmem>>, vector<2x64xf32>,
      %c0_39 = arith.constant 0 : index
      %c0_40 = arith.constant 0 : index
      %c0_41 = arith.constant 0 : index
      %69 = vector.load %arg2[%c0_39, %c0_40, %c0_41] : memref<1x16x64xf32, #tpu.memory_space<vmem>>, vector<1x16x64xf32>
      %70 = vector.shape_cast %69 : vector<1x16x64xf32> to vector<16x64xf32>
      %c2_42 = arith.constant 2 : index
      %c0_43 = arith.constant 0 : index
      %71 = vector.load %arg8[%c2_42, %c0_43] : memref<20x64xf32, #tpu.memory_space<vmem>>, vector<16x64xf32>
      tpu.vector_store %arg8[%c2_42, %c0_43], %70 {strides = array<i32>} : memref<20x64xf32, #tpu.memory_space<vmem>>, vector<16x64xf32>,
    } else {
    }
    %c8_i32 = arith.constant 8 : i32
    %3 = arith.muli %arg1, %c8_i32 : i32
    %4 = tpu.assume_multiple %3, 8 : i32
    %5 = arith.index_cast %4 : i32 to index
    %c0 = arith.constant 0 : index
    %6 = vector.load %arg8[%5, %c0] : memref<20x64xf32, #tpu.memory_space<vmem>>, vector<12x64xf32>
    %cst = arith.constant 0.000000e+00 : f32
    %7 = vector.broadcast %cst : f32 to vector<10x64xf32>
    %8 = vector.extract_strided_slice %6 {offsets = [0, 0], sizes = [10, 64], strides = [1, 1]} : vector<12x64xf32> to vector<10x64xf32>
    %c0_1 = arith.constant 0 : index
    %c0_2 = arith.constant 0 : index
    %c0_3 = arith.constant 0 : index
    %9 = vector.load %arg3[%c0_1, %c0_2, %c0_3] : memref<3x64x64xf32, #tpu.memory_space<vmem>>, vector<1x64x64xf32>
    %10 = vector.shape_cast %9 : vector<1x64x64xf32> to vector<64x64xf32>
    %cst_4 = arith.constant dense<0.000000e+00> : vector<10x64xf32>
    %11 = tpu.matmul %8, %10, %cst_4 {dimension_numbers = #tpu.dot_dimension_numbers<[1], [0], [0], [1], [0, 0, 1, 1], [], []>} : vector<10x64xf32>, vector<64x64xf32>, vector<10x64xf32> -> vector<10x64xf32>
    %12 = arith.addf %7, %11 : vector<10x64xf32>
    %13 = vector.extract_strided_slice %6 {offsets = [1, 0], sizes = [10, 64], strides = [1, 1]} : vector<12x64xf32> to vector<10x64xf32>
    %c1 = arith.constant 1 : index
    %c0_5 = arith.constant 0 : index
    %c0_6 = arith.constant 0 : index
    %14 = vector.load %arg3[%c1, %c0_5, %c0_6] : memref<3x64x64xf32, #tpu.memory_space<vmem>>, vector<1x64x64xf32>
    %15 = vector.shape_cast %14 : vector<1x64x64xf32> to vector<64x64xf32>
    %cst_7 = arith.constant dense<0.000000e+00> : vector<10x64xf32>
    %16 = tpu.matmul %13, %15, %cst_7 {dimension_numbers = #tpu.dot_dimension_numbers<[1], [0], [0], [1], [0, 0, 1, 1], [], []>} : vector<10x64xf32>, vector<64x64xf32>, vector<10x64xf32> -> vector<10x64xf32>
    %17 = arith.addf %12, %16 : vector<10x64xf32>
    %18 = vector.extract_strided_slice %6 {offsets = [2, 0], sizes = [10, 64], strides = [1, 1]} : vector<12x64xf32> to vector<10x64xf32>
    %c2 = arith.constant 2 : index
    %c0_8 = arith.constant 0 : index
    %c0_9 = arith.constant 0 : index
    %19 = vector.load %arg3[%c2, %c0_8, %c0_9] : memref<3x64x64xf32, #tpu.memory_space<vmem>>, vector<1x64x64xf32>
    %20 = vector.shape_cast %19 : vector<1x64x64xf32> to vector<64x64xf32>
    %cst_10 = arith.constant dense<0.000000e+00> : vector<10x64xf32>
    %21 = tpu.matmul %18, %20, %cst_10 {dimension_numbers = #tpu.dot_dimension_numbers<[1], [0], [0], [1], [0, 0, 1, 1], [], []>} : vector<10x64xf32>, vector<64x64xf32>, vector<10x64xf32> -> vector<10x64xf32>
    %22 = arith.addf %17, %21 : vector<10x64xf32>
    %c0_11 = arith.constant 0 : index
    %c0_12 = arith.constant 0 : index
    %23 = vector.load %arg4[%c0_11, %c0_12] : memref<1x64xf32, #tpu.memory_space<vmem>>, vector<1x64xf32>
    %24 = vector.broadcast %23 : vector<1x64xf32> to vector<10x64xf32>
    %25 = arith.addf %22, %24 : vector<10x64xf32>
    %cst_13 = arith.constant 0.000000e+00 : f32
    %26 = vector.broadcast %cst_13 : f32 to vector<10x64xf32>
    %27 = arith.maximumf %25, %26 : vector<10x64xf32>
    %c1_i32 = arith.constant 1 : i32
    %28 = arith.subi %4, %c1_i32 : i32
    %29 = tpu.iota {dimensions = array<i32: 0>} : vector<10x1xi32>
    %30 = vector.broadcast %28 : i32 to vector<10x1xi32>
    %31 = arith.addi %30, %29 : vector<10x1xi32>
    %c0_i32_14 = arith.constant 0 : i32
    %32 = vector.broadcast %c0_i32_14 : i32 to vector<10x1xi32>
    %33 = arith.cmpi sge, %31, %32 : vector<10x1xi32>
    %c16_i32 = arith.constant 16 : i32
    %34 = vector.broadcast %c16_i32 : i32 to vector<10x1xi32>
    %35 = arith.cmpi slt, %31, %34 : vector<10x1xi32>
    %36 = arith.andi %33, %35 : vector<10x1xi1>
    %cst_15 = arith.constant 0.000000e+00 : f32
    %37 = vector.shape_cast %36 : vector<10x1xi1> to vector<10x1xi1>
    %38 = vector.broadcast %37 : vector<10x1xi1> to vector<10x64xi1>
    %39 = vector.broadcast %cst_15 : f32 to vector<10x64xf32>
    %40 = arith.select %38, %27, %39 : vector<10x64xi1>, vector<10x64xf32>
    %cst_16 = arith.constant 0.000000e+00 : f32
    %41 = vector.broadcast %cst_16 : f32 to vector<8x64xf32>
    %42 = vector.extract_strided_slice %40 {offsets = [0, 0], sizes = [8, 64], strides = [1, 1]} : vector<10x64xf32> to vector<8x64xf32>
    %c0_17 = arith.constant 0 : index
    %c0_18 = arith.constant 0 : index
    %c0_19 = arith.constant 0 : index
    %43 = vector.load %arg5[%c0_17, %c0_18, %c0_19] : memref<3x64x64xf32, #tpu.memory_space<vmem>>, vector<1x64x64xf32>
    %44 = vector.shape_cast %43 : vector<1x64x64xf32> to vector<64x64xf32>
    %cst_20 = arith.constant dense<0.000000e+00> : vector<8x64xf32>
    %45 = tpu.matmul %42, %44, %cst_20 {dimension_numbers = #tpu.dot_dimension_numbers<[1], [0], [0], [1], [0, 0, 1, 1], [], []>} : vector<8x64xf32>, vector<64x64xf32>, vector<8x64xf32> -> vector<8x64xf32>
    %46 = arith.addf %41, %45 : vector<8x64xf32>
    %47 = vector.extract_strided_slice %40 {offsets = [1, 0], sizes = [8, 64], strides = [1, 1]} : vector<10x64xf32> to vector<8x64xf32>
    %c1_21 = arith.constant 1 : index
    %c0_22 = arith.constant 0 : index
    %c0_23 = arith.constant 0 : index
    %48 = vector.load %arg5[%c1_21, %c0_22, %c0_23] : memref<3x64x64xf32, #tpu.memory_space<vmem>>, vector<1x64x64xf32>
    %49 = vector.shape_cast %48 : vector<1x64x64xf32> to vector<64x64xf32>
    %cst_24 = arith.constant dense<0.000000e+00> : vector<8x64xf32>
    %50 = tpu.matmul %47, %49, %cst_24 {dimension_numbers = #tpu.dot_dimension_numbers<[1], [0], [0], [1], [0, 0, 1, 1], [], []>} : vector<8x64xf32>, vector<64x64xf32>, vector<8x64xf32> -> vector<8x64xf32>
    %51 = arith.addf %46, %50 : vector<8x64xf32>
    %52 = vector.extract_strided_slice %40 {offsets = [2, 0], sizes = [8, 64], strides = [1, 1]} : vector<10x64xf32> to vector<8x64xf32>
    %c2_25 = arith.constant 2 : index
    %c0_26 = arith.constant 0 : index
    %c0_27 = arith.constant 0 : index
    %53 = vector.load %arg5[%c2_25, %c0_26, %c0_27] : memref<3x64x64xf32, #tpu.memory_space<vmem>>, vector<1x64x64xf32>
    %54 = vector.shape_cast %53 : vector<1x64x64xf32> to vector<64x64xf32>
    %cst_28 = arith.constant dense<0.000000e+00> : vector<8x64xf32>
    %55 = tpu.matmul %52, %54, %cst_28 {dimension_numbers = #tpu.dot_dimension_numbers<[1], [0], [0], [1], [0, 0, 1, 1], [], []>} : vector<8x64xf32>, vector<64x64xf32>, vector<8x64xf32> -> vector<8x64xf32>
    %56 = arith.addf %51, %55 : vector<8x64xf32>
    %c0_29 = arith.constant 0 : index
    %c0_30 = arith.constant 0 : index
    %57 = vector.load %arg6[%c0_29, %c0_30] : memref<1x64xf32, #tpu.memory_space<vmem>>, vector<1x64xf32>
    %58 = vector.broadcast %57 : vector<1x64xf32> to vector<8x64xf32>
    %59 = arith.addf %56, %58 : vector<8x64xf32>
    %60 = vector.extract_strided_slice %6 {offsets = [2, 0], sizes = [8, 64], strides = [1, 1]} : vector<12x64xf32> to vector<8x64xf32>
    %61 = arith.addf %59, %60 : vector<8x64xf32>
    %c0_31 = arith.constant 0 : index
    %c0_32 = arith.constant 0 : index
    %c0_33 = arith.constant 0 : index
    %62 = vector.load %arg7[%c0_31, %c0_32, %c0_33] : memref<1x8x64xf32, #tpu.memory_space<vmem>>, vector<1x8x64xf32>
    %63 = vector.shape_cast %62 : vector<1x8x64xf32> to vector<8x64xf32>
    %64 = vector.shape_cast %61 : vector<8x64xf32> to vector<1x8x64xf32>
    tpu.vector_store %arg7[%c0_31, %c0_32, %c0_33], %64 {strides = array<i32>} : memref<1x8x64xf32, #tpu.memory_space<vmem>>, vector<1x8x64xf32>,
    return
  }
  func.func @transform_0(%arg0: i32, %arg1: i32) -> (i32, i32, i32) {
    %c0_i32 = arith.constant 0 : i32
    %c0_i32_0 = arith.constant 0 : i32
    %c0_i32_1 = arith.constant 0 : i32
    return %arg0, %c0_i32, %c0_i32_0 : i32, i32, i32
  }
  func.func @transform_1(%arg0: i32, %arg1: i32) -> (i32, i32, i32) {
    %c0_i32 = arith.constant 0 : i32
    %c0_i32_0 = arith.constant 0 : i32
    %c0_i32_1 = arith.constant 0 : i32
    %c0_i32_2 = arith.constant 0 : i32
    return %c0_i32, %c0_i32_0, %c0_i32_1 : i32, i32, i32
  }
  func.func @transform_2(%arg0: i32, %arg1: i32) -> (i32, i32) {
    %c0_i32 = arith.constant 0 : i32
    %c0_i32_0 = arith.constant 0 : i32
    %c0_i32_1 = arith.constant 0 : i32
    return %c0_i32, %c0_i32_0 : i32, i32
  }
  func.func @transform_3(%arg0: i32, %arg1: i32) -> (i32, i32, i32) {
    %c0_i32 = arith.constant 0 : i32
    %c0_i32_0 = arith.constant 0 : i32
    %c0_i32_1 = arith.constant 0 : i32
    %c0_i32_2 = arith.constant 0 : i32
    return %c0_i32, %c0_i32_0, %c0_i32_1 : i32, i32, i32
  }
  func.func @transform_4(%arg0: i32, %arg1: i32) -> (i32, i32) {
    %c0_i32 = arith.constant 0 : i32
    %c0_i32_0 = arith.constant 0 : i32
    %c0_i32_1 = arith.constant 0 : i32
    return %c0_i32, %c0_i32_0 : i32, i32
  }
  func.func @transform_5(%arg0: i32, %arg1: i32) -> (i32, i32, i32) {
    %c0_i32 = arith.constant 0 : i32
    %c0_i32_0 = arith.constant 0 : i32
    return %arg0, %arg1, %c0_i32 : i32, i32, i32
  }
}

</mosaic_0001>

<bundles_post_ra>
// kernel: tpu_custom_call.1
= control target key start
LH: loop header
LB: loop body
LE: loop exit
PB: predicated region body
PF: predicated region fallthrough
CT: control target
= control target key end

     0   :  { %s1875_s0 = inlined_call_operand.hbm [shape: f32[2,16,64], index: 0, kind: input, shape index: {}]   ;;  %s1876_s1 = inlined_call_operand.hbm [shape: f32[3,64,64], index: 1, kind: input, shape index: {}]   ;;  %s1877_s2 = inlined_call_operand.vmem [shape: f32[1,64], index: 2, kind: input, shape index: {}]   ;;  %s1878_s3 = inlined_call_operand.hbm [shape: f32[3,64,64], index: 3, kind: input, shape index: {}]   ;;  %s1879_s4 = inlined_call_operand.vmem [shape: f32[1,64], index: 4, kind: input, shape index: {}]   ;;  %s1880_s5 = inlined_call_operand.hbm [shape: f32[2,16,64], index: 5, kind: output, shape index: {}]  }
   0x1   :  { %1890 = sst [smem:[#allocation18_spill]] %s1876_s1 }
   0x2   :  { %1891 = sst [smem:[#allocation19_spill]] %s1878_s3 }
   0x3   :  { %1892 = sst [smem:[#allocation20_spill]] %s1879_s4 }
   0x4   :  { %1893 = sst [smem:[#allocation21_spill]] %s1880_s5 }
   0x5   :  { %10 = vsyncpa [#allocation4], 0 }
   0x6   :  { %12 = vsyncpa [#allocation4 + $0x1], 0 }
   0x7   :  { %13 = vsyncpa [#allocation7], 0 }
   0x8   :  { %14 = vsyncpa [#allocation5], 0 }
   0x9   :  { %16 = vsyncpa [#allocation5 + $0x1], 0  ;;  %s1568_s18 = smov 0   ;;  %s1570_s19 = smov 0  }
   0xa   :  { %s1572_s20 = smov 0   ;;  %s1574_s21 = smov 0  }
   0xb   :  { %s1576_s22 = smov 0   ;;  %s1578_s23 = smov 0  }
   0xc   :  { %s1580_s24 = smov 0   ;;  %s1582_s25 = smov 0  }
   0xd   :  { %s1584_s26 = smov 0   ;;  %s1586_s27 = smov 0  }
   0xe   :  { %s1588_s28 = smov 0  }
   0xf LB: > { %1894 = sst [smem:[#allocation13_spill]] %s1487_s18  ;;  %s990_s29 = sadd.s32 4294967295, %s1527_s28   ;;  %s1527_s28 = sphi %s1588_s28, %s22_s28   ;;  %s1523_s27 = sphi %s1586_s27, %s1929_s27   ;;  %s1519_s26 = sphi %s1584_s26, %s1928_s26   ;;  %s1515_s25 = sphi %s1582_s25, %s1927_s25   ;;  %s1511_s24 = sphi %s1580_s24, %s1919_s24   ;;  %s1507_s23 = sphi %s1578_s23, %s1926_s23   ;;  %s1503_s22 = sphi %s1576_s22, %s1925_s22   ;;  %s1499_s21 = sphi %s1574_s21, %s1924_s21   ;;  %s1495_s20 = sphi %s1572_s20, %s1923_s20   ;;  %s1491_s19 = sphi %s1570_s19, %s1922_s19   ;;  %s1487_s18 = sphi %s1568_s18, %s1921_s18  }
  0x10   : > { %1895 = sst [smem:[#allocation14_spill]] %s1519_s26  ;;  %s991_s30 = sadd.s32 4294967294, %s1527_s28  }
  0x11   : > { %p54_p0 = scmp.ne.s32.totalorder %s1503_s22, %s1499_s21  ;;  %p1624_p1 = scmp.eq.s32.totalorder %s990_s29, 0 }
  0x12   : > { %p163_p2 = scmp.ne.s32.totalorder %s1495_s20, %s1491_s19  ;;  %p164_p4 = scmp.eq.s32.totalorder %s990_s29, 3 }
  0x13   : > { %p1633_p3 = por %p1624_p1, %p54_p0  ;;  %p169_p5 = scmp.ne.s32.totalorder %s1491_s19, %s1487_s18 }
  0x14   : > { %p170_p6 = scmp.eq.s32.totalorder %s991_s30, 3  ;;  %p1639_p7 = por %p164_p4, %p163_p2 }
  0x15   : > { %p992_p8 = scmp.ge.s32.totalorder %s1527_s28, 1  ;;  %p177_p10 = scmp.lt.s32.totalorder %s1527_s28, 5 }
  0x16   : > { %s1898_s9 = scalar_select %p1639_p7, 1, 0 }
  0x17   : > { %p1644_p9 = por %p170_p6, %p169_p5  ;;  %p1649_p11 = pnand %p992_p8, %p177_p10 }
  0x18   : > { %1899 = sst [smem:[#allocation15_spill]] %s1898_s9  ;;  %s1529_s12 = smov [#allocation6]  }
  0x19   : > { %s1900_s10 = scalar_select %p1644_p9, 1, 0 }
  0x1a   : > { %s189_s13 = sshll.u32 %s1529_s12, 4  ;;  %p1207_p12 = pneg %p1649_p11  ;;  %s190_s13 = int_to_ptr.vmem [resolvable:$true] %s189_s13 }
  0x1b   : > { %1901 = sst [smem:[#allocation16_spill]] %s1900_s10  ;;  %s1530_s15 = smov [#allocation8]  }
  0x1c   : > { %p1657_p13 = pnand %p1207_p12, %p1624_p1  ;;  %s205_s16 = sshll.u32 %s1530_s15, 4  ;;  %s206_s16 = int_to_ptr.vmem [resolvable:$true] %s205_s16 }
  0x1d   : > { %s1334_s17 = scalar_lea.vmem %s190_s13, 3072  ;;  %p1342_p6 = scmp.lt.s32.totalorder %s190_s13, %s190_s13 }
  0x1e   : > { %p1325_p0 = pneg %p1657_p13  ;;  %p1335_p2 = scmp.ne.s32.totalorder %s190_s13, %s1334_s17 }
  0x1f   : > { %p1343_p8 = scmp.lt.s32.totalorder %s1334_s17, %s1334_s17 }
  0x20   : > { %p1337_p4 = pnand %p1335_p2, %p1325_p0 }
  0x21   : > { %p1344_p10 = por %p1343_p8, %p1342_p6 }
  0x22   : > { %p1338_p5 = pneg %p1337_p4 }
  0x24   : > { %p1345_p12 = pnand %p1344_p10, %p1338_p5 }
  0x26   : > { %1348 = shalt.err (!%p1345_p12)
}
  0x27   : > { %s1881_s21 = smov 128   ;;  %s1882_s29 = smov 8  }
  0x28   : > { %s1904_s1 = sld [smem:[#allocation18_spill]]  ;;  %s1360_s15 = scalar_lea.vmem %s206_s16, 3072 }
  0x29   : > { %p1361_p2 = scmp.ne.s32.totalorder %s206_s16, %s1360_s15  ;;  %p1368_p5 = scmp.lt.s32.totalorder %s206_s16, %s206_s16 }
  0x2a   : > { %p1369_p8 = scmp.lt.s32.totalorder %s1360_s15, %s1360_s15 }
  0x2b   : > { %p1363_p4 = pnand %p1361_p2, %p1325_p0 }
  0x2c   : > { %p1370_p10 = por %p1369_p8, %p1368_p5 }
  0x2d   : > { %p1364_p6 = pneg %p1363_p4 }
  0x2e   : > { %1210 = dma.hbm_to_vmem [thread:$0]  (!%p1657_p13), %s1904_s1, 3072, %s190_s13, [#allocation7], %s1881_s21, %s1881_s21, %s1882_s29  }
  0x2f   : > { %p1371_p12 = pnand %p1370_p10, %p1364_p6 }
  0x31   : > { %1374 = shalt.err (!%p1371_p12)
}
  0x32   : > { %s1905_s3 = sld [smem:[#allocation19_spill]]  ;;  %s31_s13 = sadd.s32 1, %s1519_s26 }
  0x33   : > { %s34_s14 = sadd.s32 1, %s1523_s27  ;;  %p32_p0 = scmp.ge.s32.totalorder %s31_s13, 2 }
  0x34   : > { %s41_s30 = sadd.s32 1, %s1507_s23  ;;  %p48_p2 = scmp.ne.s32.totalorder %s1507_s23, %s1503_s22 }
  0x35   : > { %p49_p4 = scmp.eq.s32.totalorder %s1527_s28, 0  ;;  %s1931_s13 = smov (%p32_p0, %s31_s13), 0 }
  0x36   : > { %1906 = sst [smem:[#allocation17_spill]] %s1931_s13  ;;  %s1933_s14 = smov (!%p32_p0, %s34_s14), %s1523_s27 }
  0x37   : > { %p1694_p6 = por %p49_p4, %p48_p2  ;;  %s149_s12 = ssub.s32 %s1519_s26, %s1931_s13 }
  0x38   : > { %1213 = dma.hbm_to_vmem [thread:$0]  (!%p1657_p13), %s1905_s3, 3072, %s206_s16, [#allocation7], %s1881_s21, %s1881_s21, %s1882_s29  }
  0x39   : > { %p36_p13 = scmp.ge.s32.totalorder %s1933_s14, 2  ;;  %p1224_p5 = scmp.lt.s32.totalorder %s1527_s28, 4 }
  0x3a   : > { %s222_s16 = sand.u32 1, %s1507_s23   ;;  %s1023_s15 = sshll.u32 %s1523_s27, 8 }
  0x3b   : > { %s1935_s14 = smov (%p36_p13, %s1933_s14), 0  ;;  %s996_s17 = sshll.u32 %s222_s16, 4 }
  0x3c   : > { %s38_s21 = ssub.s32 %s1523_s27, %s1935_s14  ;;  %s232_s10 = scalar_lea.hbm %s1875_s0, %s1023_s15 }
  0x3d   : > { %p39_p8 = scmp.eq.s32.totalorder %s38_s21, 0  ;;  %s150_s29 = sor.u32 %s149_s12, %s38_s21 }
  0x3e   : > { %p151_p10 = scmp.eq.s32.totalorder %s150_s29, 0  ;;  %s1908_s13 = sadd.s32 1, %s1495_s20 }
  0x3f   : > { %s1711_s18 = scalar_select %p39_p8, %s1507_s23, %s41_s30  }
  0x40   : > { %s1716_s26 = scalar_select %p151_p10, %s1495_s20, %s1908_s13  }
  0x41   : > { %s226_s5 = scalar_lea.vmem [#allocation3], %s996_s17  ;;  %p1722_p12 = pnand %p1224_p5, %p1694_p6 }
  0x42   : > { %s233_s4 = sshll.u32 %s226_s5, 4  ;;  %s223_s21 = scalar_lea.sflag [#allocation4], %s222_s16  ;;  %s234_s4 = int_to_ptr.vmem [resolvable:$true] %s233_s4 }
  0x43   : > { %p1377_p0 = pneg %p1722_p12  ;;  %s1388_s1 = scalar_lea.vmem %s234_s4, 256 }
  0x44   : > { %p1389_p2 = scmp.ne.s32.totalorder %s234_s4, %s1388_s1  ;;  %s1533_s3 = smov [#allocation3]  }
  0x45   : > { %s1393_s29 = sshll.u32 %s1533_s3, 4  ;;  %s1394_s29 = int_to_ptr.vmem [resolvable:$false] %s1393_s29 }
  0x46   : > { %p1391_p4 = pnand %p1389_p2, %p1377_p0  ;;  %s1395_s13 = scalar_lea.vmem %s1394_s29, 512 }
  0x47   : > { %p1396_p8 = scmp.lt.s32.totalorder %s234_s4, %s1394_s29  ;;  %p1397_p10 = scmp.lt.s32.totalorder %s1395_s13, %s1388_s1 }
  0x48   : > { %p1392_p13 = pneg %p1391_p4 }
  0x49   : > { %p1398_p9 = por %p1397_p10, %p1396_p8 }
  0x4b   : > { %p1399_p6 = pnand %p1398_p9, %p1392_p13 }
  0x4d   : > { %1402 = shalt.err (!%p1399_p6)
}
  0x4e   : > { %s1910_s5 = smov 8   ;;  %s1911_s30 = smov 128  }
  0x4f   : > { %1217 = dma.hbm_to_vmem [thread:$0]  (!%p1722_p12), %s232_s10, 256, %s234_s4, %s223_s21, %s1911_s30, %s1911_s30, %s1910_s5  }
  0x50   : > { %245 = sbr.rel (%p1649_p11) target bundleno = 566 (0x236), region = 40  ;;  %s247_s7 = sand.u32 (!%p1649_p11), 1, %s1503_s22  }
  0x51   : > { %s1000_s12 = sshll.u32 (!%p1649_p11), %s247_s7, 4  ;;  %s248_s16 = scalar_lea.sflag (!%p1649_p11), [#allocation4], %s247_s7 }
  0x52   : > { %s251_s15 = scalar_lea.vmem (!%p1649_p11), [#allocation3], %s1000_s12 }
  0x55   : > { %1474 = dma.done.wait (%p1633_p3), %s248_s16, 256  }
  0x56   : > { %1476 = vsyncadd (%p1633_p3), %s248_s16, 4294967040 }
  0x57   : > { %1478 = dma.done.wait (%p1624_p1), [#allocation7], 6144  }
  0x58   : > { %1480 = vsyncadd (%p1624_p1), [#allocation7], 4294961152  ;;  %s283_s4 = sand.u32 1, %s1491_s19   ;;  %p1004_p9 = scmp.ne.s32.totalorder %s1511_s24, 0 }
  0x59   : > { %s1747_s9 = sshll.u32 %s283_s4, 3 }
  0x5a   : > { %s285_s10 = scalar_lea.vmem [#allocation9], %s1747_s9  ;;  %289 = sbr.rel (%p1004_p9) target bundleno = 98 (0x62), region = 56 }
  0x5f   : > { %vm290_vm0 = vcmask 517120   ;;  %v293_v0 = vld [vmem:[%s251_s15] sm:$0xff]  ;;  %vm295_vm1 = vcmask 523264   ;;  %v294_v1 = vld [vmem:[%s251_s15 + $0x8] sm:$0xff]  ;;  %v1534_v2 = vmov 0.0  }
  0x60   : > { %291 = vst.msk [vmem:[#allocation2] sm:$0x3] %vm290_vm0, %v1534_v2  ;;  %292 = vst.msk [vmem:[#allocation2 + $0x12] sm:$0x3] %vm290_vm0, %v1534_v2 }
  0x61   : > { %296 = vst.msk [vmem:[#allocation2 + $0x2] sm:$0xff] %vm295_vm1, %v293_v0  ;;  %297 = vst.msk [vmem:[#allocation2 + $0xa] sm:$0xff] %vm295_vm1, %v294_v1 }
  0x62 PF: > { %v318_v3 = vld [vmem:[#allocation6 + $0x78] sm:$0xff]  ;;  %v317_v5 = vld [vmem:[#allocation6 + $0x70] sm:$0xff]  ;;  %s1005_s6 = sshll.u32 %s1511_s24, 3  ;;  %v316_v7 = vld [vmem:[#allocation6 + $0x68] sm:$0xff]  ;;  %vm321_vm2 = vcmask 1046528   ;;  %vm325_vm3 = vcmask 523264   ;;  %v590_v52 = vlaneseq }
  0x63   : > { %v309_v4 = vld [vmem:[#allocation6 + $0x38] sm:$0xff]  ;;  %1081 = vmatprep.subr.mxu0 %v318_v3  ;;  %v308_v6 = vld [vmem:[#allocation6 + $0x30] sm:$0xff]  ;;  %v307_v8 = vld [vmem:[#allocation6 + $0x28] sm:$0xff]  ;;  %s299_s8 = scalar_lea.vmem [#allocation2], %s1005_s6  ;;  %vm493_vm4 = vcmask 1045504   ;;  %v1535_v37 = vmov 0.0  }
  0x64   : > { %1100 = vmatprep.subr.mxu1 %v309_v4  ;;  %1082 = vmatpush3.msra.mxu0 %v318_v3  ;;  %v315_v9 = vld [vmem:[#allocation6 + $0x60] sm:$0xff]  ;;  %v314_v11 = vld [vmem:[#allocation6 + $0x58] sm:$0xff]  ;;  %v313_v15 = vld [vmem:[#allocation6 + $0x50] sm:$0xff]  ;;  %vm1536_vm5 = vmmov 0   ;;  %v591_v53 = vshrl.u32 %v590_v52, 7  ;;  %s1013_s11 = sadd.s32 4294967295, %s1005_s6 }
  0x65   : > { %1101 = vmatpush3.msra.mxu1 %v309_v4  ;;  %1083 = vmatprep.subr.mxu0 %v317_v5  ;;  %v306_v10 = vld [vmem:[#allocation6 + $0x20] sm:$0xff]  ;;  %v305_v12 = vld [vmem:[#allocation6 + $0x18] sm:$0xff]  ;;  %v304_v16 = vld [vmem:[#allocation6 + $0x10] sm:$0xff]  ;;  %v593_v57 = vstv %s1013_s11  ;;  %s1019_s1 = sshll.u32 %s1515_s25, 1  ;;  %s1913_s30 = sld [smem:[#allocation20_spill]] }
  0x66   : > { %1102 = vmatprep.subr.mxu1 %v308_v6  ;;  %1084 = vmatpush3.msra.mxu0 %v317_v5  ;;  %v312_v19 = vld [vmem:[#allocation6 + $0x48] sm:$0xff]  ;;  %v311_v21 = vld [vmem:[#allocation6 + $0x40] sm:$0xff]  ;;  %v492_v26 = vld [vmem:[#allocation6 + $0xb8] sm:$0xff]  ;;  %v592_v54 = vadd.s32 8, %v591_v53  ;;  %v594_v62 = vadd.s32 %v593_v57, %v591_v53  ;;  %s882_s29 = sadd.s32 %s1511_s24, %s1019_s1  ;;  %s886_s12 = sshll.u32 %s285_s10, 4  ;;  %s887_s12 = int_to_ptr.vmem [resolvable:$true] %s886_s12 }
  0x67   : > { %1103 = vmatpush3.msra.mxu1 %v308_v6  ;;  %1085 = vmatprep.subr.mxu0 %v316_v7  ;;  %v303_v20 = vld [vmem:[#allocation6 + $0x8] sm:$0xff]  ;;  %v302_v22 = vld [vmem:[#allocation6] sm:$0xff]  ;;  %v491_v28 = vld [vmem:[#allocation6 + $0xb0] sm:$0xff]  ;;  %s1020_s7 = sshll.u32 %s882_s29, 7  ;;  %s1914_s6 = sld [smem:[#allocation21_spill]] }
  0x68   : > { %1104 = vmatprep.subr.mxu1 %v307_v8  ;;  %1086 = vmatpush3.msra.mxu0 %v316_v7  ;;  %v300_v13 = vld [vmem:[%s299_s8] sm:$0xff]  ;;  %v1754_v14 = vld [vmem:[%s299_s8 + $0x8] sm:$0xf]  ;;  %v489_v30 = vld [vmem:[#allocation6 + $0xa0] sm:$0xff]  ;;  %v595_v58 = vadd.s32 %v593_v57, %v592_v54  ;;  %vm596_vm8 = vcmp.ge.s32.totalorder %v594_v62, 0  ;;  %vm598_vm9 = vcmp.lt.s32.totalorder %v594_v62, 16 }
  0x69   : > { %1105 = vmatpush3.msra.mxu1 %v307_v8  ;;  %1087 = vmatprep.subr.mxu0 %v315_v9  ;;  %v322_v17 = vrot.slane %v300_v13, 1  ;;  %v323_v18 = vrot.slane %v1754_v14, 1  ;;  %v494_v23 = vrot.slane %v300_v13, 2  ;;  %v495_v24 = vrot.slane %v1754_v14, 2  ;;  %v490_v29 = vld [vmem:[#allocation6 + $0xa8] sm:$0xff]  ;;  %v488_v31 = vld [vmem:[#allocation6 + $0x98] sm:$0xff]  ;;  %vm600_vm11 = vmand %vm596_vm8, %vm598_vm9 }
  0x6a   : > { %1106 = vmatprep.subr.mxu1 %v306_v10  ;;  %1088 = vmatpush3.msra.mxu0 %v315_v9  ;;  %v487_v32 = vld [vmem:[#allocation6 + $0x90] sm:$0xff]  ;;  %v486_v33 = vld [vmem:[#allocation6 + $0x88] sm:$0xff]  ;;  %v485_v34 = vld [vmem:[#allocation6 + $0x80] sm:$0xff]  ;;  %vm597_vm6 = vcmp.ge.s32.totalorder %v595_v58, 0  ;;  %vm599_vm7 = vcmp.lt.s32.totalorder %v595_v58, 16  ;;  %s871_s24 = scalar_lea.sflag [#allocation5], %s283_s4 }
  0x6b   : > { %1107 = vmatpush3.msra.mxu1 %v306_v10  ;;  %1089 = vmatprep.subr.mxu0 %v314_v11  ;;  %v324_v25 = vsel %vm321_vm2, %v322_v17, %v323_v18  ;;  %v1761_v27 = vsel %vm493_vm4, %v494_v23, %v495_v24  ;;  %v615_v35 = vld [vmem:[#allocation8 + $0x38] sm:$0xff]  ;;  %v614_v38 = vld [vmem:[#allocation8 + $0x30] sm:$0xff]  ;;  %v613_v40 = vld [vmem:[#allocation8 + $0x28] sm:$0xff]  ;;  %s1403_s8 = scalar_lea.vmem %s887_s12, 128  ;;  %s1537_s11 = smov [#allocation9]  }
  0x6c   : > { %1108 = vmatprep.subr.mxu1 %v305_v12  ;;  %1090 = vmatpush3.msra.mxu0 %v314_v11  ;;  %v624_v36 = vld [vmem:[#allocation8 + $0x78] sm:$0xff]  ;;  %v623_v39 = vld [vmem:[#allocation8 + $0x70] sm:$0xff]  ;;  %v622_v41 = vld [vmem:[#allocation8 + $0x68] sm:$0xff]  ;;  %p1404_p1 = scmp.ne.s32.totalorder %s887_s12, %s1403_s8  ;;  %s1407_s17 = sshll.u32 %s1537_s11, 4  ;;  %s1408_s17 = int_to_ptr.vmem [resolvable:$false] %s1407_s17 }
  0x6d   : > { %1109 = vmatpush3.msra.mxu1 %v305_v12  ;;  %1091 = vmatprep.subr.mxu0 %v313_v15  ;;  %v612_v42 = vld [vmem:[#allocation8 + $0x20] sm:$0xff]  ;;  %v611_v44 = vld [vmem:[#allocation8 + $0x18] sm:$0xff]  ;;  %v610_v46 = vld [vmem:[#allocation8 + $0x10] sm:$0xff]  ;;  %s884_s25 = scalar_lea.hbm %s1914_s6, %s1020_s7  ;;  %s1409_s21 = scalar_lea.vmem %s1408_s17, 256 }
  0x6e   : > { %1110 = vmatprep.subr.mxu1 %v304_v16  ;;  %1092 = vmatpush3.msra.mxu0 %v313_v15  ;;  %v621_v43 = vld [vmem:[#allocation8 + $0x60] sm:$0xff]  ;;  %v620_v45 = vld [vmem:[#allocation8 + $0x58] sm:$0xff]  ;;  %v619_v47 = vld [vmem:[#allocation8 + $0x50] sm:$0xff]  ;;  %p1405_p3 = pnand %p1404_p1, %p1639_p7  ;;  %p1410_p5 = scmp.lt.s32.totalorder %s887_s12, %s1408_s17 }
  0x6f   : > { %1111 = vmatpush3.msra.mxu1 %v304_v16  ;;  %1093 = vmatprep.subr.mxu0 %v312_v19  ;;  %v609_v48 = vld [vmem:[#allocation8 + $0x8] sm:$0xff]  ;;  %v608_v50 = vld [vmem:[#allocation8] sm:$0xff]  ;;  %vm601_vm10 = vmand %vm597_vm6, %vm599_vm7  ;;  %p1411_p12 = scmp.lt.s32.totalorder %s1409_s21, %s1403_s8 }
  0x70   : > { %1112 = vmatprep.subr.mxu1 %v303_v20  ;;  %1094 = vmatpush3.msra.mxu0 %v312_v19  ;;  %v618_v49 = vld [vmem:[#allocation8 + $0x48] sm:$0xff]  ;;  %v617_v51 = vld [vmem:[#allocation8 + $0x40] sm:$0xff]  ;;  %v781_v15 = vld [vmem:[#allocation8 + $0xb0] sm:$0xff]  ;;  %p1406_p11 = pneg %p1405_p3 }
  0x71   : > { %1113 = vmatpush3.msra.mxu1 %v303_v20  ;;  %1095 = vmatprep.subr.mxu0 %v311_v21  ;;  %v1012_v0 = vld [vmem:[%s1877_s2] ss:$0 sm:$0xff]  ;;  %v779_v17 = vld [vmem:[#allocation8 + $0xa0] sm:$0xff]  ;;  %v777_v19 = vld [vmem:[#allocation8 + $0x90] sm:$0xff]  ;;  %p1412_p0 = por %p1411_p12, %p1410_p5 }
  0x72   : > { %1114 = vmatprep.subr.mxu1 %v302_v22  ;;  %1096 = vmatpush3.msra.mxu0 %v311_v21  ;;  %v780_v16 = vld [vmem:[#allocation8 + $0xa8] sm:$0xff] }
  0x73   : > { %1097 = vmatprep.mubr.msk.f32.mxu0 %vm325_vm3, %v324_v25  ;;  %1115 = vmatpush3.msra.mxu1 %v302_v22  ;;  %v776_v20 = vld [vmem:[#allocation8 + $0x88] sm:$0xff]  ;;  %v775_v22 = vld [vmem:[#allocation8 + $0x80] sm:$0xff]  ;;  %p1413_p2 = pnand %p1412_p0, %p1406_p11 }
  0x74   : > { %1116 = vmatprep.mubr.msk.f32.mxu1 %vm325_vm3, %v300_v13  ;;  %1098 = vmatmul.mubr.msk.f32.vlgmr.msra.gmra.mxu0 %vm325_vm3, %v323_v18  ;;  %v782_v13 = vld [vmem:[#allocation8 + $0xb8] sm:$0xff] }
  0x75   : > { %1117 = vmatmul.mubr.msk.f32.vlgmr.msra.gmra.mxu1 %vm325_vm3, %v1754_v14  ;;  %1119 = vmatprep.subr.mxu0 %v492_v26  ;;  %v778_v18 = vld [vmem:[#allocation8 + $0x98] sm:$0xff] }
  0x76   : > { %1135 = vmatprep.mubr.msk.f32.mxu0 %vm325_vm3, %v1761_v27  ;;  %1120 = vmatpush3.msra.mxu0 %v492_v26 }
  0x77   : > { %1121 = vmatprep.subr.mxu0 %v491_v28  ;;  %1138 = vmatprep.subr.mxu1 %v1535_v37 }
  0x78   : > { %1122 = vmatpush3.msra.mxu0 %v491_v28  ;;  %1139 = vmatpush3.msra.mxu1 %v624_v36 }
  0x79   : > { %1123 = vmatprep.subr.mxu0 %v490_v29  ;;  %1140 = vmatprep.subr.mxu1 %v1535_v37 }
  0x7a   : > { %1124 = vmatpush3.msra.mxu0 %v490_v29  ;;  %1141 = vmatpush3.msra.mxu1 %v623_v39 }
  0x7b   : > { %1125 = vmatprep.subr.mxu0 %v489_v30  ;;  %1142 = vmatprep.subr.mxu1 %v1535_v37 }
  0x7c   : > { %1126 = vmatpush3.msra.mxu0 %v489_v30  ;;  %1143 = vmatpush3.msra.mxu1 %v622_v41 }
  0x7d   : > { %1127 = vmatprep.subr.mxu0 %v488_v31  ;;  %1144 = vmatprep.subr.mxu1 %v1535_v37 }
  0x7e   : > { %1128 = vmatpush3.msra.mxu0 %v488_v31  ;;  %1145 = vmatpush3.msra.mxu1 %v621_v43 }
  0x7f   : > { %1129 = vmatprep.subr.mxu0 %v487_v32  ;;  %1146 = vmatprep.subr.mxu1 %v1535_v37 }
  0x80   : > { %1130 = vmatpush3.msra.mxu0 %v487_v32  ;;  %1147 = vmatpush3.msra.mxu1 %v620_v45  ;;  %v1017_v32 = vld [vmem:[%s1913_s30] ss:$0 sm:$0xff] }
  0x81   : > { %1131 = vmatprep.subr.mxu0 %v486_v33  ;;  %1148 = vmatprep.subr.mxu1 %v1535_v37 }
  0x82   : > { %1132 = vmatpush3.msra.mxu0 %v486_v33  ;;  %1149 = vmatpush3.msra.mxu1 %v619_v47 }
  0x83   : > { %1133 = vmatprep.subr.mxu0 %v485_v34  ;;  %1150 = vmatprep.subr.mxu1 %v1535_v37 }
  0x84   : > { %1134 = vmatpush3.msra.mxu0 %v485_v34  ;;  %1151 = vmatpush3.msra.mxu1 %v618_v49 }
  0x85   : > { %1136 = vmatmul.mubr.msk.f32.vlgmr.msra.gmra.mxu0 %vm325_vm3, %v495_v24  ;;  %1157 = vmatprep.subr.mxu0 %v1535_v37 }
  0x86   : > { %1158 = vmatpush3.msra.mxu0 %v615_v35  ;;  %1173 = vmatprep.mubr.msk.f32.mxu0 %vm1536_vm5, %v1535_v37 }
  0x87   : > { %1159 = vmatprep.subr.mxu0 %v1535_v37  ;;  %1152 = vmatprep.subr.mxu1 %v1535_v37 }
  0x88   : > { %1160 = vmatpush3.msra.mxu0 %v614_v38  ;;  %1153 = vmatpush3.msra.mxu1 %v617_v51 }
  0x89   : > { %1161 = vmatprep.subr.mxu0 %v1535_v37  ;;  %1154 = vmatprep.mubr.msk.f32.mxu1 %vm1536_vm5, %v1535_v37 }
  0x8a   : > { %1162 = vmatpush3.msra.mxu0 %v613_v40  ;;  %1176 = vmatprep.subr.mxu1 %v1535_v37 }
  0x8b   : > { %1163 = vmatprep.subr.mxu0 %v1535_v37 }
  0x8c   : > { %1164 = vmatpush3.msra.mxu0 %v612_v42 }
  0x8d   : > { %1165 = vmatprep.subr.mxu0 %v1535_v37 }
  0x8e   : > { %1166 = vmatpush3.msra.mxu0 %v611_v44 }
  0x8f   : > { %1167 = vmatprep.subr.mxu0 %v1535_v37 }
  0x90   : > { %1168 = vmatpush3.msra.mxu0 %v610_v46 }
  0x91   : > { %1169 = vmatprep.subr.mxu0 %v1535_v37 }
  0x92   : > { %1170 = vmatpush3.msra.mxu0 %v609_v48 }
  0x93   : > { %1171 = vmatprep.subr.mxu0 %v1535_v37 }
  0x94   : > { %1172 = vmatpush3.msra.mxu0 %v608_v50 }
 0x134   : > { %v1099_v55 = vpop.f32.mrf.mxu0 }
 0x135   : > { %v1118_v56 = vpop.f32.mrf.mxu1 }
 0x136   : > { %v396_v59 = vpop.f32.mrf.mxu0  ;;  %v481_v61 = vadd.f32 %v1118_v56, %v1099_v55 }
 0x137   : > { %v475_v60 = vpop.f32.mrf.mxu1 }
 0x138   : > { %v476_v1 = vadd.f32 %v475_v60, %v396_v59 }
 0x145   : > { %v1137_v63 = vpop.f32.mrf.mxu0 }
 0x146   : > { %v577_v2 = vadd.f32 %v1137_v63, %v481_v61 }
 0x147   : > { %v567_v3 = vpop.f32.mrf.mxu0 }
 0x148   : > { %v586_v4 = vadd.f32 %v1012_v0, %v577_v2  ;;  %v576_v5 = vadd.f32 %v567_v3, %v476_v1 }
 0x14a   : > { %v588_v6 = vmax.f32 %v586_v4, 0.0  ;;  %v585_v7 = vadd.f32 %v1012_v0, %v576_v5 }
 0x14c   : > { %v607_v8 = vsel %vm601_vm10, %v588_v6, 0.0  ;;  %v587_v9 = vmax.f32 %v585_v7, 0.0 }
 0x14d   : > { %v628_v11 = vrot.slane %v607_v8, 1  ;;  %v784_v23 = vrot.slane %v607_v8, 2 }
 0x14e   : > { %v606_v10 = vsel %vm600_vm11, %v587_v9, 0.0 }
 0x14f   : > { %v627_v12 = vrot.slane %v606_v10, 1  ;;  %1174 = vmatmul.mubr.msk.f32.vlgmr.msra.gmra.mxu0 %vm325_vm3, %v606_v10  ;;  %v783_v21 = vrot.slane %v606_v10, 2 }
 0x151   : > { %v629_v14 = vsel %vm321_vm2, %v627_v12, %v628_v11  ;;  %v785_v24 = vsel %vm493_vm4, %v783_v21, %v784_v23 }
 0x152   : > { %1155 = vmatmul.mubr.msk.f32.vlgmr.msra.gmra.mxu1 %vm325_vm3, %v629_v14 }
 0x153   : > { %1177 = vmatpush3.msra.mxu1 %v782_v13  ;;  %1192 = vmatprep.mubr.msk.f32.mxu1 %vm1536_vm5, %v1535_v37 }
 0x154   : > { %1178 = vmatprep.subr.mxu1 %v1535_v37 }
 0x155   : > { %1179 = vmatpush3.msra.mxu1 %v781_v15 }
 0x156   : > { %1180 = vmatprep.subr.mxu1 %v1535_v37 }
 0x157   : > { %1181 = vmatpush3.msra.mxu1 %v780_v16 }
 0x158   : > { %1182 = vmatprep.subr.mxu1 %v1535_v37 }
 0x159   : > { %1183 = vmatpush3.msra.mxu1 %v779_v17 }
 0x15a   : > { %1184 = vmatprep.subr.mxu1 %v1535_v37 }
 0x15b   : > { %1185 = vmatpush3.msra.mxu1 %v778_v18 }
 0x15c   : > { %1186 = vmatprep.subr.mxu1 %v1535_v37 }
 0x15d   : > { %1187 = vmatpush3.msra.mxu1 %v777_v19 }
 0x15e   : > { %1188 = vmatprep.subr.mxu1 %v1535_v37 }
 0x15f   : > { %1189 = vmatpush3.msra.mxu1 %v776_v20 }
 0x160   : > { %1190 = vmatprep.subr.mxu1 %v1535_v37 }
 0x161   : > { %1191 = vmatpush3.msra.mxu1 %v775_v22 }
 0x162   : > { %1193 = vmatmul.mubr.msk.f32.vlgmr.msra.gmra.mxu1 %vm325_vm3, %v785_v24 }
 0x20f   : > { %v770_v25 = vpop.f32.mrf.mxu0 }
 0x211   : > { %v1175_v26 = vpop.f32.mrf.mxu0 }
 0x212   : > { %v698_v28 = vpop.f32.mrf.mxu1 }
 0x213   : > { %v771_v30 = vadd.f32 %v770_v25, %v698_v28 }
 0x214   : > { %v1156_v29 = vpop.f32.mrf.mxu1 }
 0x222   : > { %v854_v31 = vpop.f32.mrf.mxu1 }
 0x223   : > { %v858_v33 = vadd.f32 %v854_v31, %v771_v30 }
 0x224   : > { %v1194_v34 = vpop.f32.mrf.mxu1 }
 0x225   : > { %v866_v35 = vadd.f32 %v1017_v32, %v858_v33 }
 0x227   : > { %v868_v36 = vadd.f32 %v866_v35, %v1761_v27 }
 0x229   : > { %869 = vst.msk [vmem:[%s285_s10] sm:$0xff] %vm325_vm3, %v868_v36 }
 0x22a   : > { %1416 = shalt.err (!%p1413_p2)
}
 0x22b   : > { %s1417_s1 = scalar_lea.hbm %s884_s25, 128  ;;  %s1421_s10 = scalar_lea.hbm %s1914_s6, 512 }
 0x22c   : > { %p1418_p4 = scmp.ne.s32.totalorder %s884_s25, %s1417_s1  ;;  %p1422_p10 = scmp.lt.s32.totalorder %s884_s25, %s1914_s6 }
 0x22d   : > { %p1423_p6 = scmp.lt.s32.totalorder %s1421_s10, %s1417_s1 }
 0x22e   : > { %p1419_p13 = pnand %p1418_p4, %p1639_p7 }
 0x22f   : > { %p1424_p9 = por %p1423_p6, %p1422_p10 }
 0x230   : > { %p1420_p8 = pneg %p1419_p13 }
 0x232   : > { %p1425_p1 = pnand %p1424_p9, %p1420_p8 }
 0x234   : > { %1428 = shalt.err (!%p1425_p1)
}
 0x235   : > { %1205 = dma.vmem_to_hbm [thread:$0]  (%p1639_p7), %s887_s12, 128, %s884_s25, %s871_s24  }
 0x236 PF: > { %s1915_s5 = sld [smem:[#allocation13_spill]]  ;;  %p1227_p3 = scmp.ge.s32.totalorder %s1527_s28, 2 }
 0x237   : > { %s1916_s30 = sld [smem:[#allocation16_spill]] }
 0x23c   : > { %s898_s7 = sand.u32 1, %s1915_s5  }
 0x23d   : > { %p1917_p11 = scmp.ne.s32.totalorder %s1916_s30, 0  ;;  %s899_s16 = scalar_lea.sflag [#allocation5], %s898_s7 }
 0x23f   : > { %p1219_p5 = pnand %p1227_p3, %p1917_p11 }
 0x241   : > { %p1220_p12 = pneg %p1219_p5 }
 0x243   : > { %1482 = dma.done.wait (%p1220_p12), %s899_s16, 128  }
 0x244   : > { %1484 = vsyncadd (%p1220_p12), %s899_s16, 4294967168  ;;  %s22_s28 = sadd.s32 1, %s1527_s28   ;;  %s1918_s3 = smov %s1711_s18 }
 0x245   : > { %p19_p0 = scmp.ge.s32.totalorder %s22_s28, 6   ;;  %s1919_s24 = sld [smem:[#allocation14_spill]] }
 0x246   : > { %s1920_s12 = sld [smem:[#allocation17_spill]]  ;;  %s1921_s18 = smov %s1491_s19 }
 0x247   : > { %s1922_s19 = smov %s1495_s20  ;;  %s1923_s20 = smov %s1716_s26 }
 0x248   : > { %s1924_s21 = smov %s1503_s22  ;;  %s1925_s22 = smov %s1507_s23 }
 0x249   : > { %s1926_s23 = smov %s1918_s3  ;;  %s1927_s25 = smov %s1523_s27 }
 0x24a   : > { %s1929_s27 = smov %s1935_s14  ;;  %21 = sbr.rel (!%p19_p0) target bundleno = 15 (0xf), region = 102 }
 0x24c   : > { %s1928_s26 = smov %s1920_s12 }
 0x24f   :  { %904 = vsyncpa [#allocation4], 1 }
 0x250   :  { %906 = vsyncpa [#allocation4 + $0x1], 1 }
 0x251   :  { %907 = vsyncpa [#allocation7], 1 }
 0x252   :  { %908 = vsyncpa [#allocation5], 1 }
 0x253   :  { %910 = vsyncpa [#allocation5 + $0x1], 1 }

</bundles_post_ra>
